<compile_context>
chip_gen: v5e
topology: v5e:2x2
jax: 0.10.0
libtpu: 0.0.40
codegen_flags: <defaults>
</compile_context>

<pallas_src>
import functools

import jax
import jax.numpy as jnp
import numpy as np
from jax.experimental import pallas as pl
from jax.experimental.pallas import tpu as pltpu


def _softplus_pt(x, beta: float, inv_beta: float):
    """PyTorch nn.Softplus(beta, threshold=20) semantics, f32 math."""
    bx = beta * x
    return jnp.where(bx > 20.0,
                     x,
                     jnp.log1p(jnp.exp(jnp.minimum(bx, 20.0))) * inv_beta)


def _encoder_kernel(x_ref, w1_ref, b1_ref, w2_ref, b2_ref, o_ref, *,
                    beta1: float, beta2: float):
    inv_beta1 = 1.0 / beta1          # compile-time constants
    inv_beta2 = 1.0 / beta2

    # ---- fc1: (TB, D_in) @ (D_in, H), bf16 operands, f32 accumulation ----
    h = jnp.dot(x_ref[...], w1_ref[...],
                preferred_element_type=jnp.float32) + b1_ref[...]
    h = _softplus_pt(h, beta1, inv_beta1)          # f32 epilogue

    # ---- fc2: (TB, H) @ (H, D_out), f32 (weights tiny, VMEM-resident) ----
    z = jnp.dot(h, w2_ref[...],
                preferred_element_type=jnp.float32) + b2_ref[...]
    o_ref[...] = _softplus_pt(z, beta2, inv_beta2)


def prepare_params(w1, b1, w2, b2, compute_dtype=jnp.bfloat16):
    """One-time layout/dtype prep (outside the per-call hot path).

    w1: (H, D_in), b1: (H,), w2: (D_out, H), b2: (D_out,)  [PyTorch layout]
    """
    return dict(
        w1_t=w1.T.astype(compute_dtype),                 # (D_in, H) bf16
        b1=b1.reshape(1, -1).astype(jnp.float32),        # (1, H)
        w2_t=w2.T.astype(jnp.float32),                   # (H, D_out)
        b2=b2.reshape(1, -1).astype(jnp.float32),        # (1, D_out)
    )


def autoencoder_two_layers_encoder(x, params, *, block_b: int = 512):
    """x: (B, D_in) f32. params from prepare_params(). Returns (B, D_out) f32."""
    w1_t, b1 = params["w1_t"], params["b1"]
    w2_t, b2 = params["w2_t"], params["b2"]

    B, d_in = x.shape
    H = w1_t.shape[1]
    d_out = w2_t.shape[1]
    beta1, beta2 = float(H), float(d_out)      # Softplus betas = layer widths

    # Stream the dominant operand (x) as bf16: halves HBM bytes (memory-bound).
    x = x.astype(w1_t.dtype)

    # Batch tile: multiple of 8 sublanes (or the full batch); both contractions
    # stay entirely inside a block — no K-split.
    tb = B if B <= block_b else block_b
    grid = (pl.cdiv(B, tb),)

    kernel = functools.partial(_encoder_kernel, beta1=beta1, beta2=beta2)

    return pl.pallas_call(
        kernel,
        out_shape=jax.ShapeDtypeStruct((B, d_out), jnp.float32),
        grid=grid,
        in_specs=[
            pl.BlockSpec((tb, d_in), lambda i: (i, 0)),   # x: tiled over batch
            pl.BlockSpec((d_in, H), lambda i: (0, 0)),    # W1^T: whole array
            pl.BlockSpec((1, H), lambda i: (0, 0)),       # b1
            pl.BlockSpec((H, d_out), lambda i: (0, 0)),   # W2^T: whole array
            pl.BlockSpec((1, d_out), lambda i: (0, 0)),   # b2
        ],
        out_specs=pl.BlockSpec((tb, d_out), lambda i: (i, 0)),
        compiler_params=pltpu.CompilerParams(
            dimension_semantics=("parallel",),            # shard batch across TCs (v7x)
            vmem_limit_bytes=32 * 1024 * 1024,            # v7x-safe scoped VMEM budget
        ),
    )(x, w1_t, b1, w2_t, b2)


if __name__ == "__main__":
    B, INPUT_SIZE, HIDDEN_SIZE, MORE_HIDDEN_SIZE = 8, 32, 32, 16

    key = jax.random.PRNGKey(0)
    kx, k1, k2, k3, k4 = jax.random.split(key, 5)
    x = jax.random.normal(kx, (B, INPUT_SIZE), jnp.float32)

    # Deterministic init mirroring the module (xavier-style weights, small biases).
    std1 = (2.0 / (INPUT_SIZE + HIDDEN_SIZE)) ** 0.5
    std2 = (2.0 / (HIDDEN_SIZE + MORE_HIDDEN_SIZE)) ** 0.5
    w1 = std1 * jax.random.normal(k1, (HIDDEN_SIZE, INPUT_SIZE), jnp.float32)
    b1 = jax.random.uniform(k2, (HIDDEN_SIZE,), jnp.float32, -1.0, 1.0) / (INPUT_SIZE ** 0.5)
    w2 = std2 * jax.random.normal(k3, (MORE_HIDDEN_SIZE, HIDDEN_SIZE), jnp.float32)
    b2 = jax.random.uniform(k4, (MORE_HIDDEN_SIZE,), jnp.float32, -1.0, 1.0) / (HIDDEN_SIZE ** 0.5)

    params = prepare_params(w1, b1, w2, b2)
    out = autoencoder_two_layers_encoder(x, params)
    jax.block_until_ready(out)
    assert out.shape == (B, MORE_HIDDEN_SIZE) and out.dtype == jnp.float32

    # Pure-JAX f32 reference (loose tolerance accounts for the bf16 fc1 path).
    def softplus_ref(v, beta):
        bv = beta * v
        return jnp.where(bv > 20.0, v, jnp.log1p(jnp.exp(jnp.minimum(bv, 20.0))) / beta)

    h_ref = softplus_ref(x @ w1.T + b1, float(HIDDEN_SIZE))
    z_ref = softplus_ref(h_ref @ w2.T + b2, float(MORE_HIDDEN_SIZE))
    np.testing.assert_allclose(np.asarray(out), np.asarray(z_ref), atol=5e-2, rtol=5e-2)

    print("KERNEL_OK")
</pallas_src>

<mosaic_0001>
module attributes {stable_mosaic.version = 11 : i64} {
  func.func @_encoder_kernel(%arg0: i32, %arg1: memref<8x32xbf16, #tpu.memory_space<vmem>>, %arg2: memref<32x32xbf16, #tpu.memory_space<vmem>>, %arg3: memref<1x32xf32, #tpu.memory_space<vmem>>, %arg4: memref<32x16xf32, #tpu.memory_space<vmem>>, %arg5: memref<1x16xf32, #tpu.memory_space<vmem>>, %arg6: memref<8x16xf32, #tpu.memory_space<vmem>>) attributes {dimension_semantics = [#tpu.dimension_semantics<parallel>], iteration_bounds = array<i64: 1>, scalar_prefetch = 0 : i64, scratch_operands = 0 : i64, tpu.core_type = #tpu.core_type<tc>, window_params = [{transform_indices = @transform_0, window_bounds = array<i64: 8, 32>}, {pipeline_mode = #tpu.pipeline_mode<synchronous>, transform_indices = @transform_1, window_bounds = array<i64: 32, 32>}, {pipeline_mode = #tpu.pipeline_mode<synchronous>, transform_indices = @transform_2, window_bounds = array<i64: 1, 32>}, {pipeline_mode = #tpu.pipeline_mode<synchronous>, transform_indices = @transform_3, window_bounds = array<i64: 32, 16>}, {pipeline_mode = #tpu.pipeline_mode<synchronous>, transform_indices = @transform_4, window_bounds = array<i64: 1, 16>}, {transform_indices = @transform_5, window_bounds = array<i64: 8, 16>}]} {
    %c0 = arith.constant 0 : index
    %c0_0 = arith.constant 0 : index
    %0 = vector.load %arg1[%c0, %c0_0] : memref<8x32xbf16, #tpu.memory_space<vmem>>, vector<8x32xbf16>
    %c0_1 = arith.constant 0 : index
    %c0_2 = arith.constant 0 : index
    %1 = vector.load %arg2[%c0_1, %c0_2] : memref<32x32xbf16, #tpu.memory_space<vmem>>, vector<32x32xbf16>
    %cst = arith.constant dense<0.000000e+00> : vector<8x32xf32>
    %2 = tpu.matmul %0, %1, %cst {dimension_numbers = #tpu.dot_dimension_numbers<[1], [0], [0], [1], [0, 0, 1, 1], [], []>} : vector<8x32xbf16>, vector<32x32xbf16>, vector<8x32xf32> -> vector<8x32xf32>
    %c0_3 = arith.constant 0 : index
    %c0_4 = arith.constant 0 : index
    %3 = vector.load %arg3[%c0_3, %c0_4] : memref<1x32xf32, #tpu.memory_space<vmem>>, vector<1x32xf32>
    %4 = vector.broadcast %3 : vector<1x32xf32> to vector<8x32xf32>
    %5 = arith.addf %2, %4 : vector<8x32xf32>
    %cst_5 = arith.constant 3.200000e+01 : f32
    %6 = vector.broadcast %cst_5 : f32 to vector<8x32xf32>
    %7 = arith.mulf %6, %5 : vector<8x32xf32>
    %cst_6 = arith.constant 2.000000e+01 : f32
    %8 = vector.broadcast %cst_6 : f32 to vector<8x32xf32>
    %9 = arith.cmpf ogt, %7, %8 : vector<8x32xf32>
    %cst_7 = arith.constant 2.000000e+01 : f32
    %10 = vector.broadcast %cst_7 : f32 to vector<8x32xf32>
    %11 = arith.minimumf %7, %10 : vector<8x32xf32>
    %12 = math.exp %11 : vector<8x32xf32>
    %13 = math.log1p %12 : vector<8x32xf32>
    %cst_8 = arith.constant 3.125000e-02 : f32
    %14 = vector.broadcast %cst_8 : f32 to vector<8x32xf32>
    %15 = arith.mulf %13, %14 : vector<8x32xf32>
    %16 = arith.select %9, %5, %15 : vector<8x32xi1>, vector<8x32xf32>
    %c0_9 = arith.constant 0 : index
    %c0_10 = arith.constant 0 : index
    %17 = vector.load %arg4[%c0_9, %c0_10] : memref<32x16xf32, #tpu.memory_space<vmem>>, vector<32x16xf32>
    %cst_11 = arith.constant dense<0.000000e+00> : vector<8x16xf32>
    %18 = tpu.matmul %16, %17, %cst_11 {dimension_numbers = #tpu.dot_dimension_numbers<[1], [0], [0], [1], [0, 0, 1, 1], [], []>} : vector<8x32xf32>, vector<32x16xf32>, vector<8x16xf32> -> vector<8x16xf32>
    %c0_12 = arith.constant 0 : index
    %c0_13 = arith.constant 0 : index
    %19 = vector.load %arg5[%c0_12, %c0_13] : memref<1x16xf32, #tpu.memory_space<vmem>>, vector<1x16xf32>
    %20 = vector.broadcast %19 : vector<1x16xf32> to vector<8x16xf32>
    %21 = arith.addf %18, %20 : vector<8x16xf32>
    %cst_14 = arith.constant 1.600000e+01 : f32
    %22 = vector.broadcast %cst_14 : f32 to vector<8x16xf32>
    %23 = arith.mulf %22, %21 : vector<8x16xf32>
    %cst_15 = arith.constant 2.000000e+01 : f32
    %24 = vector.broadcast %cst_15 : f32 to vector<8x16xf32>
    %25 = arith.cmpf ogt, %23, %24 : vector<8x16xf32>
    %cst_16 = arith.constant 2.000000e+01 : f32
    %26 = vector.broadcast %cst_16 : f32 to vector<8x16xf32>
    %27 = arith.minimumf %23, %26 : vector<8x16xf32>
    %28 = math.exp %27 : vector<8x16xf32>
    %29 = math.log1p %28 : vector<8x16xf32>
    %cst_17 = arith.constant 6.250000e-02 : f32
    %30 = vector.broadcast %cst_17 : f32 to vector<8x16xf32>
    %31 = arith.mulf %29, %30 : vector<8x16xf32>
    %32 = arith.select %25, %21, %31 : vector<8x16xi1>, vector<8x16xf32>
    %c0_18 = arith.constant 0 : index
    %c0_19 = arith.constant 0 : index
    %33 = vector.load %arg6[%c0_18, %c0_19] : memref<8x16xf32, #tpu.memory_space<vmem>>, vector<8x16xf32>
    tpu.vector_store %arg6[%c0_18, %c0_19], %32 {strides = array<i32>} : memref<8x16xf32, #tpu.memory_space<vmem>>, vector<8x16xf32>,
    return
  }
  func.func @transform_0(%arg0: i32) -> (i32, i32) {
    %c0_i32 = arith.constant 0 : i32
    %c0_i32_0 = arith.constant 0 : i32
    return %arg0, %c0_i32 : i32, i32
  }
  func.func @transform_1(%arg0: i32) -> (i32, i32) {
    %c0_i32 = arith.constant 0 : i32
    %c0_i32_0 = arith.constant 0 : i32
    %c0_i32_1 = arith.constant 0 : i32
    return %c0_i32, %c0_i32_0 : i32, i32
  }
  func.func @transform_2(%arg0: i32) -> (i32, i32) {
    %c0_i32 = arith.constant 0 : i32
    %c0_i32_0 = arith.constant 0 : i32
    %c0_i32_1 = arith.constant 0 : i32
    return %c0_i32, %c0_i32_0 : i32, i32
  }
  func.func @transform_3(%arg0: i32) -> (i32, i32) {
    %c0_i32 = arith.constant 0 : i32
    %c0_i32_0 = arith.constant 0 : i32
    %c0_i32_1 = arith.constant 0 : i32
    return %c0_i32, %c0_i32_0 : i32, i32
  }
  func.func @transform_4(%arg0: i32) -> (i32, i32) {
    %c0_i32 = arith.constant 0 : i32
    %c0_i32_0 = arith.constant 0 : i32
    %c0_i32_1 = arith.constant 0 : i32
    return %c0_i32, %c0_i32_0 : i32, i32
  }
  func.func @transform_5(%arg0: i32) -> (i32, i32) {
    %c0_i32 = arith.constant 0 : i32
    %c0_i32_0 = arith.constant 0 : i32
    return %arg0, %c0_i32 : i32, i32
  }
}

</mosaic_0001>

<bundles_post_ra>
// kernel: tpu_custom_call.1
= control target key start
LH: loop header
LB: loop body
LE: loop exit
PB: predicated region body
PF: predicated region fallthrough
CT: control target
= control target key end

     0   :  { %s253_s0 = inlined_call_operand.vmem [shape: bf16[8,32], index: 0, kind: input, shape index: {}]   ;;  %s254_s1 = inlined_call_operand.vmem [shape: bf16[32,32], index: 1, kind: input, shape index: {}]   ;;  %s255_s2 = inlined_call_operand.vmem [shape: f32[1,32], index: 2, kind: input, shape index: {}]   ;;  %s256_s3 = inlined_call_operand.vmem [shape: f32[32,16], index: 3, kind: input, shape index: {}]   ;;  %s257_s4 = inlined_call_operand.vmem [shape: f32[1,16], index: 4, kind: input, shape index: {}]   ;;  %s258_s5 = inlined_call_operand.hbm [shape: f32[8,16], index: 5, kind: output, shape index: {}]  }
   0x1   :  { %v152_v0 = vld [vmem:[%s254_s1 + $0x8] sm:$0xff]  ;;  %v151_v1 = vld [vmem:[%s254_s1] sm:$0xff] }
   0x2   :  { %53 = vmatpush.bf16.msra.mxu0 %v152_v0 }
   0x3   :  { %10 = vsyncpa [#allocation3], 0  ;;  %v22_v2 = vld [vmem:[%s253_s0] sm:$0xf]  ;;  %vm43_vm0 = vcmask 261120   ;;  %v79_v3 = vld [vmem:[%s256_s3 + $0x18] sm:$0xff] }
   0x4   :  { %v78_v4 = vld [vmem:[%s256_s3 + $0x10] sm:$0xff]  ;;  %99 = vmatpush.msra.mxu1 %v79_v3  ;;  %v77_v5 = vld [vmem:[%s256_s3 + $0x8] sm:$0xff]  ;;  %v76_v6 = vld [vmem:[%s256_s3] sm:$0xff]  ;;  %s190_s7 = smov [#allocation2]   ;;  %s132_s10 = sshll.u32 %s258_s5, 4  ;;  %vm123_vm4 = vcmask 130048   ;;  %s133_s10 = int_to_ptr.hbm [resolvable:$true] %s132_s10 }
   0x5   :  { %v154_v7 = vld [vmem:[%s255_s2] ss:$0 sm:$0xff]  ;;  %s130_s8 = sshll.u32 %s190_s7, 4  ;;  %s131_s8 = int_to_ptr.vmem [resolvable:$true] %s130_s8 }
   0x6   :  { %54 = vmatpush.bf16.msra.mxu0 %v151_v1  ;;  %100 = vmatpush.msra.mxu1 %v78_v4  ;;  %v155_v25 = vld [vmem:[%s257_s4] ss:$0 sm:$0xff] }
   0x8   :  { %101 = vmatpush.msra.mxu1 %v77_v5 }
   0x9   :  { %149 = vmatmul.msk.bf16.vlgmr.msra.gmra.mxu0 %vm43_vm0, %v22_v2 }
   0xa   :  { %102 = vmatpush.msra.mxu1 %v76_v6 }
  0x86   :  { %v56_v8 = vpop.f32.mrf.mxu0 }
  0x87   :  { %v57_v9 = vadd.f32 %v154_v7, %v56_v8 }
  0x89   :  { %v60_v10 = vmul.f32 32.0, %v57_v9 }
  0x8b   :  { %v62_v11 = vmin.f32 %v60_v10, 20.0  ;;  %vm61_vm2 = vcmp.gt.f32.partialorder %v60_v10, 20.0 }
  0x8d   :  { %v63_v12 = vmul.f32 1.442695, %v62_v11 }
  0x8e   :  { %v58_v13 = vpop.f32.mrf.mxu0 }
  0x8f   :  { %156 = vpow2.f32 %v63_v12 }
  0x95   :  { %v157_v14 = vpop.eup %156 }
  0x96   :  { %v65_v15 = vadd.f32 1.0, %v157_v14  ;;  %v68_v16 = vmul.f32 -0.5, %v157_v14  ;;  %v71_v18 = vand.u32 2147483647, %v157_v14 }
  0x98   :  { %158 = vlog2.f32 %v65_v15  ;;  %v69_v17 = vadd.f32 1.0, %v68_v16  ;;  %vm72_vm1 = vcmp.lt.f32.partialorder %v71_v18, 0.0004427343 }
  0x9a   :  { %v70_v21 = vmul.f32 %v157_v14, %v69_v17 }
  0x9e   :  { %v159_v19 = vpop.eup %158 }
  0x9f   :  { %v67_v20 = vmul.f32 0.6931472, %v159_v19 }
  0xa1   :  { %v73_v22 = vsel %vm72_vm1, %v70_v21, %v67_v20 }
  0xa2   :  { %v74_v23 = vmul.f32 0.03125, %v73_v22 }
  0xa4   :  { %v75_v24 = vsel %vm61_vm2, %v57_v9, %v74_v23 }
  0xa5   :  { %150 = vmatmul.msk.f32.vlgmr.msra.gmra.mxu1 %vm43_vm0, %v75_v24 }
 0x122   :  { %v104_v26 = vpop.f32.mrf.mxu1 }
 0x123   :  { %v105_v27 = vadd.f32 %v155_v25, %v104_v26 }
 0x125   :  { %v107_v28 = vmul.f32 16.0, %v105_v27 }
 0x127   :  { %v109_v29 = vmin.f32 %v107_v28, 20.0  ;;  %vm108_vm5 = vcmp.gt.f32.partialorder %v107_v28, 20.0 }
 0x129   :  { %v110_v30 = vmul.f32 1.442695, %v109_v29 }
 0x12b   :  { %160 = vpow2.f32 %v110_v30 }
 0x131   :  { %v161_v31 = vpop.eup %160 }
 0x132   :  { %v112_v32 = vadd.f32 1.0, %v161_v31  ;;  %v115_v33 = vmul.f32 -0.5, %v161_v31  ;;  %v118_v35 = vand.u32 2147483647, %v161_v31 }
 0x134   :  { %162 = vlog2.f32 %v112_v32  ;;  %v116_v34 = vadd.f32 1.0, %v115_v33  ;;  %vm119_vm3 = vcmp.lt.f32.partialorder %v118_v35, 0.0004427343 }
 0x136   :  { %v117_v38 = vmul.f32 %v161_v31, %v116_v34 }
 0x13a   :  { %v163_v36 = vpop.eup %162 }
 0x13b   :  { %v114_v37 = vmul.f32 0.6931472, %v163_v36 }
 0x13d   :  { %v120_v39 = vsel %vm119_vm3, %v117_v38, %v114_v37 }
 0x13e   :  { %v121_v40 = vmul.f32 0.0625, %v120_v39 }
 0x140   :  { %v122_v41 = vsel %vm108_vm5, %v105_v27, %v121_v40 }
 0x141   :  { %124 = vst.msk [vmem:[#allocation2] sm:$0xff] %vm123_vm4, %v122_v41 }
 0x142   :  { %135 = dma.vmem_to_hbm [thread:$0]  %s131_s8, 128, %s133_s10, [#allocation3]  }
 0x143   :  { %188 = dma.done.wait [#allocation3], 128  }
 0x144   :  { %189 = vsyncadd [#allocation3], 4294967168 }
 0x145   :  { %140 = vsyncpa [#allocation3], 1 }

</bundles_post_ra>
